<compile_context>
chip_gen: v6e
topology: v6e:2x2x1
jax: 0.10.0
libtpu: 0.0.40
codegen_flags: <defaults>
</compile_context>

<pallas_src>
import jax
import jax.numpy as jnp
from jax.experimental import pallas as pl
from jax.experimental.pallas import tpu as pltpu


def _round_up(a: int, m: int) -> int:
    return ((a + m - 1) // m) * m


def _cls_kernel(x_ref, w1_ref, b1_ref, w2_ref, b2_ref,
                h_ref, logits_ref, probs_ref):
    # ---- bottleneck: Linear(in_dim -> bottleneck), bf16 MXU, f32 accumulate ----
    x_bf = x_ref[...].astype(jnp.bfloat16)            # VPU cast, hidden under DMA
    h = jnp.dot(x_bf, w1_ref[...],
                preferred_element_type=jnp.float32) + b1_ref[...]
    h_ref[...] = h.astype(h_ref.dtype)                 # bf16 store (half the bytes)

    # ---- fc: Linear(bottleneck -> out_dim) ----
    logits = jnp.dot(h.astype(jnp.bfloat16), w2_ref[...],
                     preferred_element_type=jnp.float32) + b2_ref[...]
    logits_ref[...] = logits.astype(logits_ref.dtype)

    # ---- softmax over the class axis (exact division; VPU/EUP have slack) ----
    m = jnp.max(logits, axis=-1, keepdims=True)
    e = jnp.exp(logits - m)
    probs_ref[...] = (e / jnp.sum(e, axis=-1, keepdims=True)).astype(probs_ref.dtype)


def cls_forward(x, w1, b1, w2, b2, *, block_b: int = 2048):
    """Pallas implementation of CLS.forward. Returns [x, h, logits, probs].

    Weight layout (transposed vs. PyTorch): W1 (in_dim, bottleneck),
    W2 (bottleneck, out_dim); biases are (1, dim) rows.
    """
    B, in_dim = x.shape
    bottleneck = w1.shape[1]
    out_dim = w2.shape[1]

    # --- batch tiling: bound padding waste and give megacore >=2 steps ---
    n_tiles = max(1, -(-B // block_b))
    if n_tiles == 1 and B > 8:
        n_tiles = 2                              # v7x: shard batch across both TCs
    tb = _round_up(-(-B // n_tiles), 8)          # sublane-aligned tile
    b_pad = n_tiles * tb
    xp = jnp.pad(x, ((0, b_pad - B), (0, 0))) if b_pad != B else x

    # --- one-time bf16 cast of (resident) weights; biases stay f32 ---
    w1_bf = w1.astype(jnp.bfloat16)
    w2_bf = w2.astype(jnp.bfloat16)
    b1_f = b1.astype(jnp.float32)
    b2_f = b2.astype(jnp.float32)

    grid = (n_tiles,)

    h, logits, probs = pl.pallas_call(
        _cls_kernel,
        out_shape=(
            jax.ShapeDtypeStruct((b_pad, bottleneck), jnp.bfloat16),
            jax.ShapeDtypeStruct((b_pad, out_dim), jnp.float32),
            jax.ShapeDtypeStruct((b_pad, out_dim), jnp.float32),
        ),
        grid=grid,
        in_specs=[
            pl.BlockSpec((tb, in_dim), lambda i: (i, 0)),          # x tile (f32)
            pl.BlockSpec((in_dim, bottleneck), lambda i: (0, 0)),  # W1 (resident)
            pl.BlockSpec((1, bottleneck), lambda i: (0, 0)),       # b1 (resident)
            pl.BlockSpec((bottleneck, out_dim), lambda i: (0, 0)), # W2 (resident)
            pl.BlockSpec((1, out_dim), lambda i: (0, 0)),          # b2 (resident)
        ],
        out_specs=[
            pl.BlockSpec((tb, bottleneck), lambda i: (i, 0)),
            pl.BlockSpec((tb, out_dim), lambda i: (i, 0)),
            pl.BlockSpec((tb, out_dim), lambda i: (i, 0)),
        ],
        compiler_params=pltpu.CompilerParams(
            dimension_semantics=("parallel",),
            # ~1.8 KB/row double-buffered + ~50 KB resident weights:
            # ~3.7 MB at TB=2048 -> far under the 32 MiB limit on all gens.
            vmem_limit_bytes=32 * 1024 * 1024,
        ),
    )(xp, w1_bf, b1_f, w2_bf, b2_f)

    # Strip batch padding (no-op when B is tile-aligned); class dim is unpadded.
    h = h[:B]
    logits = logits[:B]
    probs = probs[:B]
    return [x, h, logits, probs]


def init_cls_params(key, in_dim, out_dim, bottle_neck_dim=256):
    """Deterministic synthetic init (PyTorch-Linear-style uniform bounds)."""
    k1, k2, k3, k4 = jax.random.split(key, 4)
    bound1 = 1.0 / jnp.sqrt(in_dim)
    bound2 = 1.0 / jnp.sqrt(bottle_neck_dim)
    w1 = jax.random.uniform(k1, (in_dim, bottle_neck_dim), jnp.float32, -bound1, bound1)
    b1 = jax.random.uniform(k2, (1, bottle_neck_dim), jnp.float32, -bound1, bound1)
    w2 = jax.random.uniform(k3, (bottle_neck_dim, out_dim), jnp.float32, -bound2, bound2)
    b2 = jax.random.uniform(k4, (1, out_dim), jnp.float32, -bound2, bound2)
    return w1, b1, w2, b2


if __name__ == "__main__":
    key = jax.random.PRNGKey(0)
    kx, kp = jax.random.split(key)

    # Small shapes consistent with the module: batch=8, in_dim=32, bottleneck=256, classes=16.
    B, IN_DIM, BOTTLENECK, OUT_DIM = 8, 32, 256, 16

    x = jax.random.normal(kx, (B, IN_DIM), jnp.float32)
    w1, b1, w2, b2 = init_cls_params(kp, IN_DIM, OUT_DIM, BOTTLENECK)

    outs = cls_forward(x, w1, b1, w2, b2)
    outs = jax.block_until_ready(outs)

    # Reference in plain JAX, applying the same bf16 operand rounding the kernel
    # uses (f32 accumulation), so tolerances only need to absorb summation-order
    # differences and the bf16 storage of h.
    xr = x.astype(jnp.bfloat16).astype(jnp.float32)
    w1r = w1.astype(jnp.bfloat16).astype(jnp.float32)
    w2r = w2.astype(jnp.bfloat16).astype(jnp.float32)
    h_ref = xr @ w1r + b1
    logits_ref = h_ref.astype(jnp.bfloat16).astype(jnp.float32) @ w2r + b2
    probs_ref = jax.nn.softmax(logits_ref, axis=-1)

    assert outs[0].shape == (B, IN_DIM)
    assert outs[1].shape == (B, BOTTLENECK)
    assert outs[2].shape == (B, OUT_DIM)
    assert outs[3].shape == (B, OUT_DIM)
    assert jnp.allclose(outs[0], x)
    assert jnp.allclose(outs[1].astype(jnp.float32), h_ref, atol=2e-2, rtol=2e-2)
    assert jnp.allclose(outs[2], logits_ref, atol=1e-2, rtol=1e-2)
    assert jnp.allclose(outs[3], probs_ref, atol=1e-2, rtol=1e-2)
    assert jnp.allclose(jnp.sum(outs[3], axis=-1), jnp.ones((B,)), atol=1e-3)

    print("KERNEL_OK")
</pallas_src>

<mosaic_0001>
module attributes {stable_mosaic.version = 11 : i64} {
  func.func @_cls_kernel(%arg0: i32, %arg1: memref<8x32xf32, #tpu.memory_space<vmem>>, %arg2: memref<32x256xbf16, #tpu.memory_space<vmem>>, %arg3: memref<1x256xf32, #tpu.memory_space<vmem>>, %arg4: memref<256x16xbf16, #tpu.memory_space<vmem>>, %arg5: memref<1x16xf32, #tpu.memory_space<vmem>>, %arg6: memref<8x256xbf16, #tpu.memory_space<vmem>>, %arg7: memref<8x16xf32, #tpu.memory_space<vmem>>, %arg8: memref<8x16xf32, #tpu.memory_space<vmem>>) attributes {dimension_semantics = [#tpu.dimension_semantics<parallel>], iteration_bounds = array<i64: 1>, scalar_prefetch = 0 : i64, scratch_operands = 0 : i64, tpu.core_type = #tpu.core_type<tc>, window_params = [{transform_indices = @transform_0, window_bounds = array<i64: 8, 32>}, {pipeline_mode = #tpu.pipeline_mode<synchronous>, transform_indices = @transform_1, window_bounds = array<i64: 32, 256>}, {pipeline_mode = #tpu.pipeline_mode<synchronous>, transform_indices = @transform_2, window_bounds = array<i64: 1, 256>}, {pipeline_mode = #tpu.pipeline_mode<synchronous>, transform_indices = @transform_3, window_bounds = array<i64: 256, 16>}, {pipeline_mode = #tpu.pipeline_mode<synchronous>, transform_indices = @transform_4, window_bounds = array<i64: 1, 16>}, {transform_indices = @transform_5, window_bounds = array<i64: 8, 256>}, {transform_indices = @transform_6, window_bounds = array<i64: 8, 16>}, {transform_indices = @transform_7, window_bounds = array<i64: 8, 16>}]} {
    %c0 = arith.constant 0 : index
    %c0_0 = arith.constant 0 : index
    %0 = vector.load %arg1[%c0, %c0_0] : memref<8x32xf32, #tpu.memory_space<vmem>>, vector<8x32xf32>
    %1 = arith.truncf %0 : vector<8x32xf32> to vector<8x32xbf16>
    %c0_1 = arith.constant 0 : index
    %c0_2 = arith.constant 0 : index
    %2 = vector.load %arg2[%c0_1, %c0_2] : memref<32x256xbf16, #tpu.memory_space<vmem>>, vector<32x256xbf16>
    %cst = arith.constant dense<0.000000e+00> : vector<8x256xf32>
    %3 = tpu.matmul %1, %2, %cst {dimension_numbers = #tpu.dot_dimension_numbers<[1], [0], [0], [1], [0, 0, 1, 1], [], []>} : vector<8x32xbf16>, vector<32x256xbf16>, vector<8x256xf32> -> vector<8x256xf32>
    %c0_3 = arith.constant 0 : index
    %c0_4 = arith.constant 0 : index
    %4 = vector.load %arg3[%c0_3, %c0_4] : memref<1x256xf32, #tpu.memory_space<vmem>>, vector<1x256xf32>
    %5 = vector.broadcast %4 : vector<1x256xf32> to vector<8x256xf32>
    %6 = arith.addf %3, %5 : vector<8x256xf32>
    %7 = arith.truncf %6 : vector<8x256xf32> to vector<8x256xbf16>
    %c0_5 = arith.constant 0 : index
    %c0_6 = arith.constant 0 : index
    %8 = vector.load %arg6[%c0_5, %c0_6] : memref<8x256xbf16, #tpu.memory_space<vmem>>, vector<8x256xbf16>
    tpu.vector_store %arg6[%c0_5, %c0_6], %7 {strides = array<i32>} : memref<8x256xbf16, #tpu.memory_space<vmem>>, vector<8x256xbf16>,
    %9 = arith.truncf %6 : vector<8x256xf32> to vector<8x256xbf16>
    %c0_7 = arith.constant 0 : index
    %c0_8 = arith.constant 0 : index
    %10 = vector.load %arg4[%c0_7, %c0_8] : memref<256x16xbf16, #tpu.memory_space<vmem>>, vector<256x16xbf16>
    %cst_9 = arith.constant dense<0.000000e+00> : vector<8x16xf32>
    %11 = tpu.matmul %9, %10, %cst_9 {dimension_numbers = #tpu.dot_dimension_numbers<[1], [0], [0], [1], [0, 0, 1, 1], [], []>} : vector<8x256xbf16>, vector<256x16xbf16>, vector<8x16xf32> -> vector<8x16xf32>
    %c0_10 = arith.constant 0 : index
    %c0_11 = arith.constant 0 : index
    %12 = vector.load %arg5[%c0_10, %c0_11] : memref<1x16xf32, #tpu.memory_space<vmem>>, vector<1x16xf32>
    %13 = vector.broadcast %12 : vector<1x16xf32> to vector<8x16xf32>
    %14 = arith.addf %11, %13 : vector<8x16xf32>
    %c0_12 = arith.constant 0 : index
    %c0_13 = arith.constant 0 : index
    %15 = vector.load %arg7[%c0_12, %c0_13] : memref<8x16xf32, #tpu.memory_space<vmem>>, vector<8x16xf32>
    tpu.vector_store %arg7[%c0_12, %c0_13], %14 {strides = array<i32>} : memref<8x16xf32, #tpu.memory_space<vmem>>, vector<8x16xf32>,
    %cst_14 = arith.constant dense<0xFF800000> : vector<8xf32>
    %16 = vector.multi_reduction <maximumf>, %14, %cst_14 [1] : vector<8x16xf32> to vector<8xf32>
    %17 = vector.shape_cast %16 : vector<8xf32> to vector<8x1xf32>
    %18 = vector.broadcast %17 : vector<8x1xf32> to vector<8x16xf32>
    %19 = arith.subf %14, %18 : vector<8x16xf32>
    %20 = math.exp %19 : vector<8x16xf32>
    %cst_15 = arith.constant dense<0.000000e+00> : vector<8xf32>
    %21 = vector.multi_reduction <add>, %20, %cst_15 [1] : vector<8x16xf32> to vector<8xf32>
    %22 = vector.shape_cast %21 : vector<8xf32> to vector<8x1xf32>
    %23 = vector.broadcast %22 : vector<8x1xf32> to vector<8x16xf32>
    %24 = arith.divf %20, %23 : vector<8x16xf32>
    %c0_16 = arith.constant 0 : index
    %c0_17 = arith.constant 0 : index
    %25 = vector.load %arg8[%c0_16, %c0_17] : memref<8x16xf32, #tpu.memory_space<vmem>>, vector<8x16xf32>
    tpu.vector_store %arg8[%c0_16, %c0_17], %24 {strides = array<i32>} : memref<8x16xf32, #tpu.memory_space<vmem>>, vector<8x16xf32>,
    return
  }
  func.func @transform_0(%arg0: i32) -> (i32, i32) {
    %c0_i32 = arith.constant 0 : i32
    %c0_i32_0 = arith.constant 0 : i32
    return %arg0, %c0_i32 : i32, i32
  }
  func.func @transform_1(%arg0: i32) -> (i32, i32) {
    %c0_i32 = arith.constant 0 : i32
    %c0_i32_0 = arith.constant 0 : i32
    %c0_i32_1 = arith.constant 0 : i32
    return %c0_i32, %c0_i32_0 : i32, i32
  }
  func.func @transform_2(%arg0: i32) -> (i32, i32) {
    %c0_i32 = arith.constant 0 : i32
    %c0_i32_0 = arith.constant 0 : i32
    %c0_i32_1 = arith.constant 0 : i32
    return %c0_i32, %c0_i32_0 : i32, i32
  }
  func.func @transform_3(%arg0: i32) -> (i32, i32) {
    %c0_i32 = arith.constant 0 : i32
    %c0_i32_0 = arith.constant 0 : i32
    %c0_i32_1 = arith.constant 0 : i32
    return %c0_i32, %c0_i32_0 : i32, i32
  }
  func.func @transform_4(%arg0: i32) -> (i32, i32) {
    %c0_i32 = arith.constant 0 : i32
    %c0_i32_0 = arith.constant 0 : i32
    %c0_i32_1 = arith.constant 0 : i32
    return %c0_i32, %c0_i32_0 : i32, i32
  }
  func.func @transform_5(%arg0: i32) -> (i32, i32) {
    %c0_i32 = arith.constant 0 : i32
    %c0_i32_0 = arith.constant 0 : i32
    return %arg0, %c0_i32 : i32, i32
  }
  func.func @transform_6(%arg0: i32) -> (i32, i32) {
    %c0_i32 = arith.constant 0 : i32
    %c0_i32_0 = arith.constant 0 : i32
    return %arg0, %c0_i32 : i32, i32
  }
  func.func @transform_7(%arg0: i32) -> (i32, i32) {
    %c0_i32 = arith.constant 0 : i32
    %c0_i32_0 = arith.constant 0 : i32
    return %arg0, %c0_i32 : i32, i32
  }
}

</mosaic_0001>

<bundles_post_ra>
// kernel: tpu_custom_call.1
= control target key start
LH: loop header
LB: loop body
LE: loop exit
PB: predicated region body
PF: predicated region fallthrough
CT: control target
= control target key end

     0   :  { %13 = vsyncpa [#allocation3], 0  ;;  %v488_v2 = vmov 0   ;;  %vm64_vm0 = vcmask 261120   ;;  %s614_s0 = inlined_call_operand.vmem [shape: f32[8,32], index: 0, kind: input, shape index: {}]   ;;  %s615_s1 = inlined_call_operand.vmem [shape: bf16[32,256], index: 1, kind: input, shape index: {}]   ;;  %s616_s2 = inlined_call_operand.vmem [shape: f32[1,256], index: 2, kind: input, shape index: {}]   ;;  %s617_s3 = inlined_call_operand.vmem [shape: bf16[256,16], index: 3, kind: input, shape index: {}]   ;;  %s618_s4 = inlined_call_operand.vmem [shape: f32[1,16], index: 4, kind: input, shape index: {}]   ;;  %s619_s5 = inlined_call_operand.hbm [shape: bf16[8,256], index: 5, kind: output, shape index: {0}]   ;;  %s620_s6 = inlined_call_operand.hbm [shape: f32[8,16], index: 6, kind: output, shape index: {1}]   ;;  %s621_s7 = inlined_call_operand.hbm [shape: f32[8,16], index: 7, kind: output, shape index: {2}]  }
   0x1   :  { %v398_v0 = vld [vmem:[%s615_s1 + $0x14] ss:$8 sps:$4 sm:$0xff]   ;;  %v400_v1 = vld [vmem:[%s615_s1 + $0x10] ss:$8 sps:$4 sm:$0xff]   ;;  %100 = vmatprep.mubr.bf16.mxu0 %v488_v2  ;;  %v401_v3 = vld [vmem:[%s615_s1 + $0x4] ss:$8 sps:$4 sm:$0xff]  }
   0x2   :  { %80 = vmatprep.subr.bf16.mxu0 %v398_v0  ;;  %v403_v4 = vld [vmem:[%s615_s1] ss:$8 sps:$4 sm:$0xff]   ;;  %v404_v6 = vld [vmem:[%s617_s3 + $0x78] sm:$0xff]   ;;  %v406_v8 = vld [vmem:[%s617_s3 + $0x70] sm:$0xff]  }
   0x3   :  { %v26_v5 = vld [vmem:[%s614_s0] sm:$0xff]  ;;  %81 = vmatpush1.bf16.msra.mxu0 %v400_v1  ;;  %v405_v7 = vld [vmem:[%s617_s3 + $0x38] sm:$0xff]   ;;  %372 = vmatprep.subr.bf16.mxu1 %v404_v6  ;;  %v407_v10 = vld [vmem:[%s617_s3 + $0x30] sm:$0xff]  }
   0x4   :  { %82 = vmatprep.subr.bf16.mxu0 %v401_v3  ;;  %v27_v9 = vpack.c.bf16 %v26_v5, %v26_v5  ;;  %373 = vmatpush3.bf16.msra.mxu1 %v405_v7  ;;  %v408_v11 = vld [vmem:[%s617_s3 + $0x68] sm:$0xff]   ;;  %v410_v13 = vld [vmem:[%s617_s3 + $0x60] sm:$0xff]   ;;  %v412_v15 = vld [vmem:[%s617_s3 + $0x58] sm:$0xff]  }
   0x5   :  { %374 = vmatprep.subr.bf16.mxu1 %v406_v8  ;;  %v409_v12 = vld [vmem:[%s617_s3 + $0x28] sm:$0xff]   ;;  %v411_v14 = vld [vmem:[%s617_s3 + $0x20] sm:$0xff]   ;;  %v413_v16 = vld [vmem:[%s617_s3 + $0x18] sm:$0xff]  }
   0x7   :  { %83 = vmatpush1.bf16.msra.mxu0 %v403_v4 }
   0x8   :  { %375 = vmatpush3.bf16.msra.mxu1 %v407_v10 }
   0x9   :  { %376 = vmatprep.subr.bf16.mxu1 %v408_v11 }
   0xa   :  { %352 = vmatmul.mubr.msk.bf16.vlgmr.msra.gmra.mxu0 %vm64_vm0, %v27_v9 }
   0xc   :  { %377 = vmatpush3.bf16.msra.mxu1 %v409_v12 }
   0xd   :  { %378 = vmatprep.subr.bf16.mxu1 %v410_v13 }
  0x10   :  { %379 = vmatpush3.bf16.msra.mxu1 %v411_v14 }
  0x11   :  { %14 = vsyncpa [#allocation5], 0  ;;  %380 = vmatprep.subr.bf16.mxu1 %v412_v15  ;;  %v414_v17 = vld [vmem:[%s617_s3 + $0x50] sm:$0xff]   ;;  %v416_v19 = vld [vmem:[%s617_s3 + $0x48] sm:$0xff]   ;;  %v34_v23 = vlaneseq  ;;  %vm293_vm1 = vcmask 130048   ;;  %s490_s19 = smov [#allocation2]  }
  0x12   :  { %v415_v18 = vld [vmem:[%s617_s3 + $0x10] sm:$0xff]   ;;  %v417_v20 = vld [vmem:[%s617_s3 + $0x8] sm:$0xff]   ;;  %v418_v21 = vld [vmem:[%s617_s3 + $0x40] sm:$0xff]   ;;  %s313_s20 = sshll.u32 %s490_s19, 4  ;;  %s314_s20 = int_to_ptr.vmem [resolvable:$true] %s313_s20 }
  0x13   :  { %v419_v22 = vld [vmem:[%s617_s3] sm:$0xff]   ;;  %v35_v24 = vshrl.u32 %v34_v23, 7 }
  0x14   :  { %381 = vmatpush3.bf16.msra.mxu1 %v413_v16  ;;  %v32_v26 = vld [vmem:[%s616_s2] sm:$0x3]  ;;  %s489_s2 = smov [#allocation4]  }
  0x15   :  { %382 = vmatprep.subr.bf16.mxu1 %v414_v17  ;;  %v36_v25 = vsub.s32 0, %v35_v24  ;;  %v40_v27 = vsub.s32 1, %v35_v24  ;;  %v354_v40 = vld [vmem:[%s618_s4] ss:$0 sm:$0xff]  ;;  %s323_s4 = sshll.u32 %s489_s2, 4  ;;  %s324_s4 = int_to_ptr.vmem [resolvable:$true] %s323_s4 }
  0x16   :  { %s424_s21 = scalar_lea.vmem %s324_s4, 128  ;;  %p429_p1 = scmp.lt.s32.totalorder %s324_s4, %s324_s4 }
  0x17   :  { %v37_v28 = vrot.slane %v32_v26, %v36_v25  ;;  %v41_v29 = vrot.slane %v32_v26, %v40_v27  ;;  %p425_p0 = scmp.ne.s32.totalorder %s324_s4, %s424_s21  ;;  %p430_p2 = scmp.lt.s32.totalorder %s424_s21, %s424_s21 }
  0x18   :  { %383 = vmatpush3.bf16.msra.mxu1 %v415_v18 }
  0x19   :  { %384 = vmatprep.subr.bf16.mxu1 %v416_v19  ;;  %p431_p3 = por %p430_p2, %p429_p1 }
  0x1b   :  { %p432_p4 = pnand %p431_p3, %p425_p0 }
  0x1c   :  { %385 = vmatpush3.bf16.msra.mxu1 %v417_v20 }
  0x1d   :  { %386 = vmatprep.subr.bf16.mxu1 %v418_v21 }
  0x20   :  { %387 = vmatpush3.bf16.msra.mxu1 %v419_v22 }
  0xca   :  { %v102_v30 = vpop.f32.mrf.mxu0 }
  0xcb   :  { %v103_v31 = vadd.f32 %v102_v30, %v37_v28 }
  0xcc   :  { %v104_v32 = vpop.f32.mrf.mxu0 }
  0xcd   :  { %v105_v33 = vadd.f32 %v104_v32, %v41_v29  ;;  %v109_v37 = vpack.c.bf16 %v103_v31, %v103_v31 }
  0xce   :  { %v106_v34 = vpop.f32.mrf.mxu0 }
  0xcf   :  { %v110_v35 = vpack.c.bf16 %v105_v33, %v105_v33  ;;  %v371_v36 = vpack.c.bf16 %v105_v33, %v103_v31 }
  0xd0   :  { %v107_v38 = vpop.f32.mrf.mxu0 }
  0xd1   :  { %285 = vmatprep.mubr.bf16.mxu1 %v110_v35  ;;  %117 = vst [vmem:[#allocation2] sm:$0xff] %v371_v36 }
  0xd2   :  { %286 = vmatmul.mubr.bf16.vlgmr.msra.gmra.mxu1 %v109_v37 }
 0x192   :  { %v388_v39 = vpop.f32.mrf.mxu1 }
 0x194   :  { %v389_v41 = vpop.f32.mrf.mxu1 }
 0x195   :  { %v390_v42 = vadd.f32 %v389_v41, %v388_v39 }
 0x196   :  { %v391_v43 = vpop.f32.mrf.mxu1 }
 0x197   :  { %v288_v44 = vadd.f32 %v390_v42, %v354_v40 }
 0x198   :  { %v392_v45 = vpop.f32.mrf.mxu1 }
 0x199   :  { %v295_v46 = vsel %vm293_vm1, %v288_v44, -inf  ;;  %294 = vst.msk [vmem:[#allocation4] sm:$0xff] %vm293_vm1, %v288_v44 }
 0x19a   :  { %296 = vmax.xlane.f32.xlu0 %v295_v46 }
 0x223   :  { %v297_v47 = vpop.xlane.xlu0 %296 }
 0x224   :  { %v298_v48 = vsub.f32 %v288_v44, %v297_v47 }
 0x226   :  { %v299_v49 = vmul.f32 1.442695, %v298_v48 }
 0x228   :  { %420 = vpow2.f32 %v299_v49 }
 0x235   :  { %v421_v50 = vpop.eup %420 }
 0x236   :  { %v301_v51 = vsel %vm293_vm1, %v421_v50, 0.0 }
 0x237   :  { %302 = vadd.xlane.f32.xlu0 %v301_v51 }
 0x238   :  { %435 = shalt.err (!%p432_p4)
}
 0x239   :  { %326 = dma.vmem_to_hbm [thread:$0]  %s324_s4, 128, %s620_s6, [#allocation5]  }
 0x23a   :  { %s444_s24 = scalar_lea.vmem %s314_s20, 128  ;;  %p449_p6 = scmp.lt.s32.totalorder %s314_s20, %s314_s20 }
 0x23b   :  { %p445_p5 = scmp.ne.s32.totalorder %s314_s20, %s444_s24  ;;  %p450_p7 = scmp.lt.s32.totalorder %s444_s24, %s444_s24 }
 0x23d   :  { %p451_p8 = por %p450_p7, %p449_p6 }
 0x23f   :  { %p452_p9 = pnand %p451_p8, %p445_p5 }
 0x241   :  { %455 = shalt.err (!%p452_p9)
}
 0x242   :  { %316 = dma.vmem_to_hbm [thread:$0]  %s314_s20, 128, %s619_s5, [#allocation3]  }
 0x243   :  { %s491_s27 = smov [#allocation6]  }
 0x244   :  { %s333_s28 = sshll.u32 %s491_s27, 4  ;;  %s334_s28 = int_to_ptr.vmem [resolvable:$true] %s333_s28 }
 0x245   :  { %s464_s6 = scalar_lea.vmem %s334_s28, 128  ;;  %p469_p11 = scmp.lt.s32.totalorder %s334_s28, %s334_s28 }
 0x246   :  { %p465_p10 = scmp.ne.s32.totalorder %s334_s28, %s464_s6  ;;  %p470_p12 = scmp.lt.s32.totalorder %s464_s6, %s464_s6 }
 0x248   :  { %p471_p13 = por %p470_p12, %p469_p11 }
 0x24a   :  { %p472_p0 = pnand %p471_p13, %p465_p10 }
 0x2c0   :  { %v303_v52 = vpop.xlane.xlu0 %302 }
 0x2c1   :  { %422 = vrcp.f32 %v303_v52 }
 0x2ce   :  { %v423_v53 = vpop.eup %422 }
 0x2cf   :  { %v305_v54 = vmul.f32 %v423_v53, %v421_v50 }
 0x2d1   :  { %306 = vst.msk [vmem:[#allocation6] sm:$0xff] %vm293_vm1, %v305_v54 }
 0x2d2   :  { %475 = shalt.err (!%p472_p0)
}
 0x2d3   :  { %336 = dma.vmem_to_hbm [thread:$0]  %s334_s28, 128, %s621_s7, [#allocation5]  }
 0x2d4   :  { %484 = dma.done.wait [#allocation3], 128  }
 0x2d5   :  { %485 = vsyncadd [#allocation3], 4294967168 }
 0x2d6   :  { %486 = dma.done.wait [#allocation5], 256  }
 0x2d7   :  { %487 = vsyncadd [#allocation5], 4294967040 }
 0x2d8   :  { %346 = vsyncpa [#allocation3], 1 }
 0x2d9   :  { %347 = vsyncpa [#allocation5], 1 }

</bundles_post_ra>
